<compile_context>
chip_gen: v6e
topology: v6e:2x2x1
jax: 0.10.0
libtpu: 0.0.40
codegen_flags: <defaults>
</compile_context>

<pallas_src>
import jax
import jax.numpy as jnp
import numpy as np
from jax.experimental import pallas as pl
from jax.experimental.pallas import tpu as pltpu

EPS = 1e-5  # PyTorch BatchNorm1d default eps


def _rup8(n):
    return -(-n // 8) * 8


def slab_layout(B, L, C, H, O):
    """Row/lane layout of the packed parameter slab (all offsets 8-aligned)."""
    BL = B * L
    s1 = _rup8(C)            # per-tap row stride, conv1
    s2 = _rup8(H)            # per-tap row stride, conv2
    r, off = {}, 0
    r['w1'] = off; off += 3 * s1     # 3 taps of (C, H)
    r['b1'] = off; off += 8          # (1, H)
    r['w2'] = off; off += 3 * s2     # 3 taps of (H, H)
    r['b2'] = off; off += 8          # (1, H)
    r['wf'] = off; off += _rup8(H)   # (H, O), 1/L pool scale folded in
    r['bf'] = off; off += 8          # (1, O)
    r['P'] = off;  off += _rup8(B)   # (B, BL) 0/1 pool indicator
    r['rows'] = off
    r['s1'], r['s2'] = s1, s2
    r['lanes'] = max(128, ((max(H, O, BL) + 127) // 128) * 128)
    return r


def make_tsfe_kernel(layout, H, O):
    r = layout

    def kernel(x_ref, p_ref, out_ref):
        """
        x_ref : (B, L, C)            input, channels-last
        p_ref : (rows, lanes) f32    packed folded parameters (see slab_layout)
        out_ref:(B, O)
        """
        B, L, C = x_ref.shape
        BL = B * L

        # Position of each flattened row within its sequence.
        l_idx = jax.lax.broadcasted_iota(jnp.int32, (BL, 1), 0) % L
        not_first = l_idx != 0          # rows where x[l-1] exists
        not_last = l_idx != (L - 1)     # rows where x[l+1] exists

        def conv3(act, w_row, stride, K, b_row):
            # act: (BL, K).  Shifted copies via XLU sublane rolls; the edge
            # masks zero the conv padding rows (which also kills cross-batch
            # wraparound).  Three accumulating MXU dots against aligned
            # per-tap weight slices replace the lane-concat + single dot.
            prev = jnp.where(not_first, pltpu.roll(act, shift=1, axis=0), 0.0)
            nxt = jnp.where(not_last, pltpu.roll(act, shift=BL - 1, axis=0), 0.0)
            acc = jnp.dot(prev, p_ref[w_row:w_row + K, 0:H],
                          preferred_element_type=jnp.float32)
            acc = acc + jnp.dot(act, p_ref[w_row + stride:w_row + stride + K, 0:H],
                                preferred_element_type=jnp.float32)
            acc = acc + jnp.dot(nxt, p_ref[w_row + 2 * stride:w_row + 2 * stride + K, 0:H],
                                preferred_element_type=jnp.float32)
            return acc + p_ref[b_row:b_row + 1, 0:H]

        xf = x_ref[...].reshape(BL, C)
        # Conv1d(C->H) + folded BN + ReLU   (Dropout: identity in eval mode)
        y1 = jnp.maximum(conv3(xf, r['w1'], r['s1'], C, r['b1']), 0.0)
        # Conv1d(H->H) + folded BN + ReLU
        y2 = jnp.maximum(conv3(y1, r['w2'], r['s2'], H, r['b2']), 0.0)
        # AdaptiveAvgPool1d(1) + squeeze as an MXU matmul: P is a (B, BL) 0/1
        # block indicator; the 1/L mean scale is folded into the FC weight.
        pooled = jnp.dot(p_ref[r['P']:r['P'] + B, 0:BL], y2,
                         preferred_element_type=jnp.float32)          # (B, H)
        # Linear + folded BN + ReLU
        z = jnp.dot(pooled, p_ref[r['wf']:r['wf'] + H, 0:O],
                    preferred_element_type=jnp.float32) + p_ref[r['bf']:r['bf'] + 1, 0:O]
        out_ref[...] = jnp.maximum(z, 0.0)
        # TODO(synk): training-mode Dropout / batch-statistic BN not implemented
        # (would need pltpu.prng_seed / prng_random_bits and a two-pass reduction).

    return kernel


def time_series_feature_extractor(x, slab, layout, H, O):
    """x: (B, L, C) float32, slab: packed folded params -> (B, O) float32."""
    B, L, C = x.shape
    # L multiple of 8 keeps the (B,L,C)->(BL,C) flatten layout-preserving
    # (sublane-aligned); pad L in the caller otherwise.
    assert L % 8 == 0, "pad L to a multiple of 8 before calling the kernel"
    assert B * L <= layout['lanes']
    # Problem is tiny -> single gridless block, everything resident in VMEM.
    # TODO(synk): for large B/L, tile over B with a ("parallel",) grid via
    # BlockSpec index_maps (uses both v7x TensorCores) and size double-buffered
    # tiles for v7x's 64 MiB VMEM (32 MiB scoped default).
    return pl.pallas_call(
        make_tsfe_kernel(layout, H, O),
        out_shape=jax.ShapeDtypeStruct((B, O), jnp.float32),
        in_specs=[pl.BlockSpec(memory_space=pltpu.MemorySpace.VMEM),
                  pl.BlockSpec(memory_space=pltpu.MemorySpace.VMEM)],
        out_specs=pl.BlockSpec(memory_space=pltpu.MemorySpace.VMEM),
    )(x, slab)


def init_params(key, C, H, O):
    """Raw PyTorch-layout parameters (conv OIW weights, biases, BN stats)."""
    ks = jax.random.split(key, 6)
    w1 = 0.3 * jax.random.normal(ks[0], (H, C, 3), jnp.float32)   # torch OIW
    b1 = 0.1 * jax.random.normal(ks[1], (H,), jnp.float32)
    w2 = 0.3 * jax.random.normal(ks[2], (H, H, 3), jnp.float32)
    b2 = 0.1 * jax.random.normal(ks[3], (H,), jnp.float32)
    wf = 0.3 * jax.random.normal(ks[4], (O, H), jnp.float32)      # torch (out, in)
    bf = 0.1 * jax.random.normal(ks[5], (O,), jnp.float32)

    def bn(n):
        gamma = 1.0 + 0.05 * jnp.arange(n, dtype=jnp.float32)
        beta = 0.02 * jnp.arange(n, dtype=jnp.float32)
        mean = 0.01 * jnp.arange(n, dtype=jnp.float32) - 0.05
        var = 1.0 + 0.1 * jnp.arange(n, dtype=jnp.float32)
        return (gamma, beta, mean, var)

    return dict(w1=w1, b1=b1, bn1=bn(H), w2=w2, b2=b2, bn2=bn(H),
                wf=wf, bf=bf, bnf=bn(O))


def fold_params(p, B, L):
    """One-time prep: fold eval-mode BN (and the 1/L mean pool) into weights and
    pack everything into a single (rows, lanes) f32 slab."""
    H, C, _ = p['w1'].shape
    O = p['wf'].shape[0]
    BL = B * L
    lay = slab_layout(B, L, C, H, O)
    slab = jnp.zeros((lay['rows'], lay['lanes']), jnp.float32)

    def fold_conv(w, b, bn):
        gamma, beta, mean, var = bn
        scale = gamma / jnp.sqrt(var + EPS)                       # (Hout,)
        taps = [jnp.transpose(w[:, :, k]) * scale[None, :] for k in range(3)]  # (Cin, Hout)
        bias = ((b - mean) * scale + beta)[None, :]
        return taps, bias

    taps1, b1f = fold_conv(p['w1'], p['b1'], p['bn1'])
    taps2, b2f = fold_conv(p['w2'], p['b2'], p['bn2'])
    gamma, beta, mean, var = p['bnf']
    scale = gamma / jnp.sqrt(var + EPS)
    wff = jnp.transpose(p['wf']) * scale[None, :] * (1.0 / L)     # (H, O), pool fused
    bff = ((p['bf'] - mean) * scale + beta)[None, :]
    # (B, BL) 0/1 indicator: row b selects columns b*L .. (b+1)*L-1
    pool = (jax.lax.broadcasted_iota(jnp.int32, (B, BL), 1) // L ==
            jax.lax.broadcasted_iota(jnp.int32, (B, BL), 0)).astype(jnp.float32)

    def put(s, row, a):
        return s.at[row:row + a.shape[0], 0:a.shape[1]].set(a)

    slab = put(slab, lay['w1'] + 0 * lay['s1'], taps1[0])
    slab = put(slab, lay['w1'] + 1 * lay['s1'], taps1[1])
    slab = put(slab, lay['w1'] + 2 * lay['s1'], taps1[2])
    slab = put(slab, lay['b1'], b1f)
    slab = put(slab, lay['w2'] + 0 * lay['s2'], taps2[0])
    slab = put(slab, lay['w2'] + 1 * lay['s2'], taps2[1])
    slab = put(slab, lay['w2'] + 2 * lay['s2'], taps2[2])
    slab = put(slab, lay['b2'], b2f)
    slab = put(slab, lay['wf'], wff)
    slab = put(slab, lay['bf'], bff)
    slab = put(slab, lay['P'], pool)
    return slab, lay


def reference(x, p):
    """Pure-JAX reference mirroring the PyTorch forward (NCW conv, eval BN)."""
    def bn_c(y, bn):  # y: (B, Ch, L)
        gamma, beta, mean, var = bn
        return ((y - mean[None, :, None]) / jnp.sqrt(var[None, :, None] + EPS)
                * gamma[None, :, None] + beta[None, :, None])

    x_ncw = jnp.transpose(x, (0, 2, 1))                 # x.permute(0, 2, 1)
    y = jax.lax.conv_general_dilated(x_ncw, p['w1'], (1,), [(1, 1)],
                                     dimension_numbers=('NCW', 'OIW', 'NCW'))
    y = y + p['b1'][None, :, None]
    y = jnp.maximum(bn_c(y, p['bn1']), 0.0)
    y = jax.lax.conv_general_dilated(y, p['w2'], (1,), [(1, 1)],
                                     dimension_numbers=('NCW', 'OIW', 'NCW'))
    y = y + p['b2'][None, :, None]
    y = jnp.maximum(bn_c(y, p['bn2']), 0.0)
    pooled = jnp.mean(y, axis=2)                        # AdaptiveAvgPool1d(1)+squeeze
    z = pooled @ p['wf'].T + p['bf'][None, :]
    gamma, beta, mean, var = p['bnf']
    z = (z - mean[None, :]) / jnp.sqrt(var[None, :] + EPS) * gamma[None, :] + beta[None, :]
    return jnp.maximum(z, 0.0)


if __name__ == "__main__":
    # Module config: look_back_channel_dim=4, hidden_dim=8, out_dim=16
    B, L, C, H, O = 4, 16, 4, 8, 16

    key = jax.random.PRNGKey(0)
    kx, kp = jax.random.split(key)
    x = jax.random.normal(kx, (B, L, C), jnp.float32)
    params = init_params(kp, C, H, O)
    slab, layout = fold_params(params, B, L)   # one-time param prep + packing

    out = jax.block_until_ready(time_series_feature_extractor(x, slab, layout, H, O))
    ref = jax.block_until_ready(reference(x, params))
    np.testing.assert_allclose(np.asarray(out), np.asarray(ref),
                               rtol=1e-4, atol=1e-4)
    print("KERNEL_OK")
</pallas_src>

<mosaic_0001>
module attributes {stable_mosaic.version = 11 : i64} {
  func.func @kernel(%arg0: memref<4x16x4xf32, #tpu.memory_space<vmem>>, %arg1: memref<88x128xf32, #tpu.memory_space<vmem>>, %arg2: memref<4x16xf32, #tpu.memory_space<vmem>>) attributes {dimension_semantics = [], scalar_prefetch = 0 : i64, scratch_operands = 0 : i64, tpu.core_type = #tpu.core_type<tc>} {
    %0 = tpu.iota {dimensions = array<i32: 0>} : vector<64x1xi32>
    %c16_i32 = arith.constant 16 : i32
    %c0_i32 = arith.constant 0 : i32
    %1 = arith.cmpi eq, %c16_i32, %c0_i32 : i32
    %c1_i32 = arith.constant 1 : i32
    %2 = arith.select %1, %c1_i32, %c16_i32 : i32
    %3 = vector.broadcast %2 : i32 to vector<64x1xi32>
    %4 = arith.remsi %0, %3 : vector<64x1xi32>
    %c0_i32_0 = arith.constant 0 : i32
    %5 = vector.broadcast %c0_i32_0 : i32 to vector<64x1xi32>
    %6 = arith.cmpi ne, %4, %5 : vector<64x1xi32>
    %c0_i32_1 = arith.constant 0 : i32
    %7 = vector.broadcast %c0_i32_1 : i32 to vector<64x1xi32>
    %8 = arith.cmpi slt, %4, %7 : vector<64x1xi32>
    %c0_i32_2 = arith.constant 0 : i32
    %9 = arith.cmpi slt, %2, %c0_i32_2 : i32
    %10 = vector.broadcast %9 : i1 to vector<64x1xi1>
    %11 = vector.broadcast %10 : vector<64x1xi1> to vector<64x1xi1>
    %12 = arith.xori %8, %11 : vector<64x1xi1>
    %13 = arith.andi %12, %6 : vector<64x1xi1>
    %14 = vector.broadcast %2 : i32 to vector<64x1xi32>
    %15 = arith.addi %4, %14 : vector<64x1xi32>
    %16 = arith.select %13, %15, %4 : vector<64x1xi1>, vector<64x1xi32>
    %c0_i32_3 = arith.constant 0 : i32
    %17 = vector.broadcast %c0_i32_3 : i32 to vector<64x1xi32>
    %18 = arith.cmpi ne, %16, %17 : vector<64x1xi32>
    %c15_i32 = arith.constant 15 : i32
    %19 = vector.broadcast %c15_i32 : i32 to vector<64x1xi32>
    %20 = arith.cmpi ne, %16, %19 : vector<64x1xi32>
    %c0 = arith.constant 0 : index
    %c0_4 = arith.constant 0 : index
    %c0_5 = arith.constant 0 : index
    %21 = vector.load %arg0[%c0, %c0_4, %c0_5] : memref<4x16x4xf32, #tpu.memory_space<vmem>>, vector<4x16x4xf32>
    %22 = vector.shape_cast %21 : vector<4x16x4xf32> to vector<64x4xf32>
    %c1_i32_6 = arith.constant 1 : i32
    %23 = tpu.dynamic_rotate %22 by %c1_i32_6 dim 0 : vector<64x4xf32>, i32 -> vector<64x4xf32>
    %cst = arith.constant 0.000000e+00 : f32
    %24 = vector.shape_cast %18 : vector<64x1xi1> to vector<64x1xi1>
    %25 = vector.broadcast %24 : vector<64x1xi1> to vector<64x4xi1>
    %26 = vector.broadcast %cst : f32 to vector<64x4xf32>
    %27 = arith.select %25, %23, %26 : vector<64x4xi1>, vector<64x4xf32>
    %c63_i32 = arith.constant 63 : i32
    %28 = tpu.dynamic_rotate %22 by %c63_i32 dim 0 : vector<64x4xf32>, i32 -> vector<64x4xf32>
    %cst_7 = arith.constant 0.000000e+00 : f32
    %29 = vector.shape_cast %20 : vector<64x1xi1> to vector<64x1xi1>
    %30 = vector.broadcast %29 : vector<64x1xi1> to vector<64x4xi1>
    %31 = vector.broadcast %cst_7 : f32 to vector<64x4xf32>
    %32 = arith.select %30, %28, %31 : vector<64x4xi1>, vector<64x4xf32>
    %c0_8 = arith.constant 0 : index
    %c0_9 = arith.constant 0 : index
    %33 = vector.load %arg1[%c0_8, %c0_9] : memref<88x128xf32, #tpu.memory_space<vmem>>, vector<4x8xf32>
    %cst_10 = arith.constant dense<0.000000e+00> : vector<64x8xf32>
    %34 = tpu.matmul %27, %33, %cst_10 {dimension_numbers = #tpu.dot_dimension_numbers<[1], [0], [0], [1], [0, 0, 1, 1], [], []>} : vector<64x4xf32>, vector<4x8xf32>, vector<64x8xf32> -> vector<64x8xf32>
    %c8 = arith.constant 8 : index
    %c0_11 = arith.constant 0 : index
    %35 = vector.load %arg1[%c8, %c0_11] : memref<88x128xf32, #tpu.memory_space<vmem>>, vector<4x8xf32>
    %cst_12 = arith.constant dense<0.000000e+00> : vector<64x8xf32>
    %36 = tpu.matmul %22, %35, %cst_12 {dimension_numbers = #tpu.dot_dimension_numbers<[1], [0], [0], [1], [0, 0, 1, 1], [], []>} : vector<64x4xf32>, vector<4x8xf32>, vector<64x8xf32> -> vector<64x8xf32>
    %37 = arith.addf %34, %36 : vector<64x8xf32>
    %c16 = arith.constant 16 : index
    %c0_13 = arith.constant 0 : index
    %38 = vector.load %arg1[%c16, %c0_13] : memref<88x128xf32, #tpu.memory_space<vmem>>, vector<4x8xf32>
    %cst_14 = arith.constant dense<0.000000e+00> : vector<64x8xf32>
    %39 = tpu.matmul %32, %38, %cst_14 {dimension_numbers = #tpu.dot_dimension_numbers<[1], [0], [0], [1], [0, 0, 1, 1], [], []>} : vector<64x4xf32>, vector<4x8xf32>, vector<64x8xf32> -> vector<64x8xf32>
    %40 = arith.addf %37, %39 : vector<64x8xf32>
    %c24 = arith.constant 24 : index
    %c0_15 = arith.constant 0 : index
    %41 = vector.load %arg1[%c24, %c0_15] : memref<88x128xf32, #tpu.memory_space<vmem>>, vector<1x8xf32>
    %42 = vector.broadcast %41 : vector<1x8xf32> to vector<64x8xf32>
    %43 = arith.addf %40, %42 : vector<64x8xf32>
    %cst_16 = arith.constant 0.000000e+00 : f32
    %44 = vector.broadcast %cst_16 : f32 to vector<64x8xf32>
    %45 = arith.maximumf %43, %44 : vector<64x8xf32>
    %c1_i32_17 = arith.constant 1 : i32
    %46 = tpu.dynamic_rotate %45 by %c1_i32_17 dim 0 : vector<64x8xf32>, i32 -> vector<64x8xf32>
    %cst_18 = arith.constant 0.000000e+00 : f32
    %47 = vector.shape_cast %18 : vector<64x1xi1> to vector<64x1xi1>
    %48 = vector.broadcast %47 : vector<64x1xi1> to vector<64x8xi1>
    %49 = vector.broadcast %cst_18 : f32 to vector<64x8xf32>
    %50 = arith.select %48, %46, %49 : vector<64x8xi1>, vector<64x8xf32>
    %c63_i32_19 = arith.constant 63 : i32
    %51 = tpu.dynamic_rotate %45 by %c63_i32_19 dim 0 : vector<64x8xf32>, i32 -> vector<64x8xf32>
    %cst_20 = arith.constant 0.000000e+00 : f32
    %52 = vector.shape_cast %20 : vector<64x1xi1> to vector<64x1xi1>
    %53 = vector.broadcast %52 : vector<64x1xi1> to vector<64x8xi1>
    %54 = vector.broadcast %cst_20 : f32 to vector<64x8xf32>
    %55 = arith.select %53, %51, %54 : vector<64x8xi1>, vector<64x8xf32>
    %c32 = arith.constant 32 : index
    %c0_21 = arith.constant 0 : index
    %56 = vector.load %arg1[%c32, %c0_21] : memref<88x128xf32, #tpu.memory_space<vmem>>, vector<8x8xf32>
    %cst_22 = arith.constant dense<0.000000e+00> : vector<64x8xf32>
    %57 = tpu.matmul %50, %56, %cst_22 {dimension_numbers = #tpu.dot_dimension_numbers<[1], [0], [0], [1], [0, 0, 1, 1], [], []>} : vector<64x8xf32>, vector<8x8xf32>, vector<64x8xf32> -> vector<64x8xf32>
    %c40 = arith.constant 40 : index
    %c0_23 = arith.constant 0 : index
    %58 = vector.load %arg1[%c40, %c0_23] : memref<88x128xf32, #tpu.memory_space<vmem>>, vector<8x8xf32>
    %cst_24 = arith.constant dense<0.000000e+00> : vector<64x8xf32>
    %59 = tpu.matmul %45, %58, %cst_24 {dimension_numbers = #tpu.dot_dimension_numbers<[1], [0], [0], [1], [0, 0, 1, 1], [], []>} : vector<64x8xf32>, vector<8x8xf32>, vector<64x8xf32> -> vector<64x8xf32>
    %60 = arith.addf %57, %59 : vector<64x8xf32>
    %c48 = arith.constant 48 : index
    %c0_25 = arith.constant 0 : index
    %61 = vector.load %arg1[%c48, %c0_25] : memref<88x128xf32, #tpu.memory_space<vmem>>, vector<8x8xf32>
    %cst_26 = arith.constant dense<0.000000e+00> : vector<64x8xf32>
    %62 = tpu.matmul %55, %61, %cst_26 {dimension_numbers = #tpu.dot_dimension_numbers<[1], [0], [0], [1], [0, 0, 1, 1], [], []>} : vector<64x8xf32>, vector<8x8xf32>, vector<64x8xf32> -> vector<64x8xf32>
    %63 = arith.addf %60, %62 : vector<64x8xf32>
    %c56 = arith.constant 56 : index
    %c0_27 = arith.constant 0 : index
    %64 = vector.load %arg1[%c56, %c0_27] : memref<88x128xf32, #tpu.memory_space<vmem>>, vector<1x8xf32>
    %65 = vector.broadcast %64 : vector<1x8xf32> to vector<64x8xf32>
    %66 = arith.addf %63, %65 : vector<64x8xf32>
    %cst_28 = arith.constant 0.000000e+00 : f32
    %67 = vector.broadcast %cst_28 : f32 to vector<64x8xf32>
    %68 = arith.maximumf %66, %67 : vector<64x8xf32>
    %c80 = arith.constant 80 : index
    %c0_29 = arith.constant 0 : index
    %69 = vector.load %arg1[%c80, %c0_29] : memref<88x128xf32, #tpu.memory_space<vmem>>, vector<4x64xf32>
    %cst_30 = arith.constant dense<0.000000e+00> : vector<4x8xf32>
    %70 = tpu.matmul %69, %68, %cst_30 {dimension_numbers = #tpu.dot_dimension_numbers<[1], [0], [0], [1], [0, 0, 1, 1], [], []>} : vector<4x64xf32>, vector<64x8xf32>, vector<4x8xf32> -> vector<4x8xf32>
    %c64 = arith.constant 64 : index
    %c0_31 = arith.constant 0 : index
    %71 = vector.load %arg1[%c64, %c0_31] : memref<88x128xf32, #tpu.memory_space<vmem>>, vector<8x16xf32>
    %cst_32 = arith.constant dense<0.000000e+00> : vector<4x16xf32>
    %72 = tpu.matmul %70, %71, %cst_32 {dimension_numbers = #tpu.dot_dimension_numbers<[1], [0], [0], [1], [0, 0, 1, 1], [], []>} : vector<4x8xf32>, vector<8x16xf32>, vector<4x16xf32> -> vector<4x16xf32>
    %c72 = arith.constant 72 : index
    %c0_33 = arith.constant 0 : index
    %73 = vector.load %arg1[%c72, %c0_33] : memref<88x128xf32, #tpu.memory_space<vmem>>, vector<1x16xf32>
    %74 = vector.broadcast %73 : vector<1x16xf32> to vector<4x16xf32>
    %75 = arith.addf %72, %74 : vector<4x16xf32>
    %cst_34 = arith.constant 0.000000e+00 : f32
    %76 = vector.broadcast %cst_34 : f32 to vector<4x16xf32>
    %77 = arith.maximumf %75, %76 : vector<4x16xf32>
    %c0_35 = arith.constant 0 : index
    %c0_36 = arith.constant 0 : index
    %78 = vector.load %arg2[%c0_35, %c0_36] : memref<4x16xf32, #tpu.memory_space<vmem>>, vector<4x16xf32>
    tpu.vector_store %arg2[%c0_35, %c0_36], %77 {strides = array<i32>} : memref<4x16xf32, #tpu.memory_space<vmem>>, vector<4x16xf32>,
    return
  }
}

</mosaic_0001>

<bundles_post_ra>
// kernel: tpu_custom_call.1
= control target key start
LH: loop header
LB: loop body
LE: loop exit
PB: predicated region body
PF: predicated region fallthrough
CT: control target
= control target key end

     0   :  { %7 = vsyncpa [#allocation3], 0  ;;  %s1883_s0 = inlined_call_operand.vmem [shape: f32[4,16,4], index: 0, kind: input, shape index: {}]   ;;  %s1884_s1 = inlined_call_operand.hbm [shape: f32[88,128], index: 1, kind: input, shape index: {}]   ;;  %s1885_s2 = inlined_call_operand.hbm [shape: f32[4,16], index: 2, kind: output, shape index: {}]  }
   0x1   :  { %8 = vsyncpa [#allocation4], 0  ;;  %s1586_s9 = smov [#allocation2]  }
   0x2   :  { %s16_s10 = sshll.u32 %s1586_s9, 4  ;;  %s17_s10 = int_to_ptr.vmem [resolvable:$true] %s16_s10 }
   0x3   :  { %s1550_s11 = scalar_lea.vmem %s17_s10, 1408  ;;  %p1555_p1 = scmp.lt.s32.totalorder %s17_s10, %s17_s10 }
   0x4   :  { %p1551_p0 = scmp.ne.s32.totalorder %s17_s10, %s1550_s11  ;;  %p1556_p2 = scmp.lt.s32.totalorder %s1550_s11, %s1550_s11 }
   0x6   :  { %p1557_p3 = por %p1556_p2, %p1555_p1 }
   0x8   :  { %p1558_p4 = pnand %p1557_p3, %p1551_p0 }
   0xa   :  { %1561 = shalt.err (!%p1558_p4)
}
   0xb   :  { %s1587_s12 = smov 128   ;;  %s1588_s13 = smov 8  }
   0xc   :  { %22 = dma.hbm_to_vmem [thread:$0]  %s1884_s1, 1408, %s17_s10, [#allocation3], %s1587_s12, %s1587_s12, %s1588_s13  }
   0xd   :  { %1582 = dma.done.wait [#allocation3], 1408  }
   0xe   :  { %1583 = vsyncadd [#allocation3], 4294965888  ;;  %v26_v0 = vlaneseq  ;;  %vm264_vm0 = vcmask 1043456   ;;  %vm239_vm1 = vcmask 31744   ;;  %v238_v6 = vld [vmem:[#allocation2 + $0x8] sm:$0xf] }
   0xf   :  { %v1618_v7 = vld [vmem:[%s1883_s0] sm:$0xff]  ;;  %v1623_v8 = vld [vmem:[%s1883_s0 + $0x8] sm:$0xff]  ;;  %1428 = vmatprep.subr.msk.mxu0 %vm264_vm0, %v238_v6  ;;  %v505_v11 = vld [vmem:[#allocation2 + $0x10] sm:$0xf]  ;;  %vm717_vm12 = vcmask 64512   ;;  %vm1590_vm13 = vmmov 0  }
  0x10   :  { %v1610_v1 = vshrl.u32 %v26_v0, 7  ;;  %v155_v9 = vrot.slane %v1618_v7, 7  ;;  %1430 = vmatprep.mubr.msk.f32.mxu0 %vm239_vm1, %v1618_v7  ;;  %v156_v10 = vrot.slane %v1623_v8, 7  ;;  %1429 = vmatpush3.msk.msra.mxu0 %vm264_vm0, %v238_v6  ;;  %v237_v12 = vld [vmem:[#allocation2] sm:$0xf]  ;;  %v1639_v14 = vld [vmem:[%s1883_s0 + $0x38] sm:$0xff] }
  0x11   :  { %v1644_v15 = vld [vmem:[%s1883_s0 + $0x10] sm:$0xff]  ;;  %1431 = vmatmul.mubr.msk.f32.vlgmr.msra.gmra.mxu0 %vm239_vm1, %v1623_v8  ;;  %1456 = vmatprep.subr.msk.mxu0 %vm264_vm0, %v505_v11  ;;  %v162_v17 = vrot.slane %v1639_v14, 7  ;;  %v1655_v19 = vld [vmem:[%s1883_s0 + $0x18] sm:$0xff]  ;;  %v1664_v21 = vld [vmem:[%s1883_s0 + $0x20] sm:$0xff]  ;;  %v196_v40 = vrot.slane %v1618_v7, 1  ;;  %v197_v41 = vrot.slane %v1623_v8, 1 }
  0x12   :  { %v29_v2 = vadd.s32 16, %v1610_v1  ;;  %v39_v3 = vand.u32 15, %v1610_v1  ;;  %v31_v5 = vadd.s32 32, %v1610_v1  ;;  %vm163_vm2 = vcmp.lt.s32.totalorder %v1610_v1, 1  ;;  %1442 = vmatprep.subr.msk.mxu1 %vm264_vm0, %v237_v12  ;;  %1457 = vmatpush3.msk.msra.mxu0 %vm264_vm0, %v505_v11  ;;  %v1672_v24 = vld [vmem:[%s1883_s0 + $0x30] sm:$0xff]  ;;  %v152_v30 = vld [vmem:[%s1883_s0 + $0x28] sm:$0xff] }
  0x13   :  { %v33_v16 = vadd.s32 48, %v1610_v1  ;;  %v157_v18 = vrot.slane %v1644_v15, 7  ;;  %v159_v23 = vrot.slane %v1664_v21, 7  ;;  %v28_v25 = vadd.s32 8, %v1610_v1  ;;  %1443 = vmatpush3.msk.msra.mxu1 %vm264_vm0, %v237_v12  ;;  %1433 = vmatprep.mubr.msk.f32.mxu0 %vm239_vm1, %v1644_v15  ;;  %s1591_s0 = smov [#allocation5]  }
  0x14   :  { %v53_v4 = vand.u32 15, %v29_v2  ;;  %vm1632_vm3 = vcmp.ne.s32.totalorder %v39_v3, 0  ;;  %v67_v22 = vand.u32 15, %v31_v5  ;;  %v171_v26 = vsel %vm163_vm2, %v162_v17, %v155_v9  ;;  %s1298_s3 = sshll.u32 %s1591_s0, 4  ;;  %s1299_s3 = int_to_ptr.vmem [resolvable:$true] %s1298_s3 }
  0x15   :  { %v170_v27 = vsel %vm163_vm2, %v155_v9, %v156_v10  ;;  %v158_v28 = vrot.slane %v1655_v19, 7  ;;  %v169_v29 = vsel %vm163_vm2, %v156_v10, %v157_v18  ;;  %v188_v31 = vsel %vm1632_vm3, %v171_v26, 0.0  ;;  %1434 = vmatmul.mubr.msk.f32.gmra.mxu0 %vm239_vm1, %v1655_v19  ;;  %s1562_s4 = scalar_lea.vmem %s1299_s3, 64  ;;  %p1567_p6 = scmp.lt.s32.totalorder %s1299_s3, %s1299_s3 }
  0x16   :  { %vm1657_vm4 = vcmp.ne.s32.totalorder %v53_v4, 0  ;;  %1444 = vmatprep.mubr.msk.f32.mxu1 %vm239_vm1, %v188_v31  ;;  %vm1695_vm5 = vcmp.ne.s32.totalorder %v67_v22, 0  ;;  %v161_v35 = vrot.slane %v1672_v24, 7  ;;  %v81_v36 = vand.u32 15, %v33_v16  ;;  %1436 = vmatprep.mubr.msk.f32.mxu0 %vm239_vm1, %v1664_v21  ;;  %v976_v16 = vld [vmem:[#allocation2 + $0x30] sm:$0xff]  ;;  %p1563_p5 = scmp.ne.s32.totalorder %s1299_s3, %s1562_s4  ;;  %p1568_p7 = scmp.lt.s32.totalorder %s1562_s4, %s1562_s4 }
  0x17   :  { %v190_v32 = vsel %vm1657_vm4, %v169_v29, 0.0  ;;  %v167_v34 = vsel %vm163_vm2, %v158_v28, %v159_v23  ;;  %1445 = vmatmul.mubr.msk.f32.vlgmr.msra.gmra.mxu1 %vm239_vm1, %v170_v27  ;;  %v160_v37 = vrot.slane %v152_v30, 7  ;;  %v46_v38 = vand.u32 15, %v28_v25 }
  0x18   :  { %v30_v39 = vadd.s32 24, %v1610_v1  ;;  %v198_v42 = vrot.slane %v1644_v15, 1  ;;  %1447 = vmatprep.mubr.msk.f32.mxu1 %vm239_vm1, %v190_v32  ;;  %v168_v43 = vsel %vm163_vm2, %v157_v18, %v158_v28  ;;  %v192_v44 = vsel %vm1695_vm5, %v167_v34, 0.0  ;;  %v715_v15 = vld [vmem:[#allocation2 + $0x20] sm:$0xff]  ;;  %p1569_p8 = por %p1568_p7, %p1567_p6 }
  0x19   :  { %vm204_vm6 = vcmp.lt.s32.totalorder %v1610_v1, 7  ;;  %1437 = vmatmul.mubr.msk.f32.gmra.mxu0 %vm239_vm1, %v152_v30  ;;  %vm1716_vm7 = vcmp.ne.s32.totalorder %v81_v36, 0  ;;  %v165_v46 = vsel %vm163_vm2, %v160_v37, %v161_v35  ;;  %v199_v47 = vrot.slane %v1655_v19, 1  ;;  %1484 = vmatprep.subr.mxu0 %v715_v15  ;;  %v1334_v36 = vld [vmem:[#allocation2 + $0x18] ss:$0 sm:$0xff] }
  0x1a   :  { %v200_v48 = vrot.slane %v1664_v21, 1  ;;  %1439 = vmatprep.mubr.msk.f32.mxu0 %vm239_vm1, %v1672_v24  ;;  %v166_v49 = vsel %vm163_vm2, %v159_v23, %v160_v37  ;;  %v32_v50 = vadd.s32 40, %v1610_v1  ;;  %v211_v51 = vsel %vm204_vm6, %v196_v40, %v197_v41  ;;  %p1570_p9 = pnand %p1569_p8, %p1563_p5 }
  0x1b   :  { %1448 = vmatmul.mubr.msk.f32.gmra.mxu1 %vm239_vm1, %v168_v43  ;;  %vm1733_vm8 = vcmp.ne.s32.totalorder %v46_v38, 15  ;;  %v210_v53 = vsel %vm204_vm6, %v197_v41, %v198_v42  ;;  %v60_v54 = vand.u32 15, %v30_v39  ;;  %v194_v55 = vsel %vm1716_vm7, %v165_v46, 0.0 }
  0x1c   :  { %1450 = vmatprep.mubr.msk.f32.mxu1 %vm239_vm1, %v192_v44  ;;  %v201_v56 = vrot.slane %v152_v30, 1  ;;  %v202_v57 = vrot.slane %v1672_v24, 1  ;;  %v164_v58 = vsel %vm163_vm2, %v161_v35, %v162_v17  ;;  %v230_v59 = vsel %vm1733_vm8, %v210_v53, 0.0 }
  0x1d   :  { %1440 = vmatmul.mubr.msk.f32.gmra.mxu0 %vm239_vm1, %v1639_v14  ;;  %v209_v60 = vsel %vm204_vm6, %v198_v42, %v199_v47  ;;  %vm1753_vm9 = vcmp.ne.s32.totalorder %v60_v54, 15  ;;  %v208_v62 = vsel %vm204_vm6, %v199_v47, %v200_v48  ;;  %v74_v63 = vand.u32 15, %v32_v50 }
  0x1e   :  { %1458 = vmatprep.mubr.msk.f32.mxu0 %vm239_vm1, %v211_v51  ;;  %v34_v0 = vadd.s32 56, %v1610_v1  ;;  %v232_v2 = vsel %vm1753_vm9, %v208_v62, 0.0  ;;  %v207_v3 = vsel %vm204_vm6, %v200_v48, %v201_v56  ;;  %v206_v5 = vsel %vm204_vm6, %v201_v56, %v202_v57 }
  0x1f   :  { %1451 = vmatmul.mubr.msk.f32.gmra.mxu1 %vm239_vm1, %v166_v49  ;;  %vm1767_vm10 = vcmp.ne.s32.totalorder %v74_v63, 15  ;;  %v203_v6 = vrot.slane %v1639_v14, 1  ;;  %v716_v14 = vld [vmem:[#allocation2 + $0x28] sm:$0xff]  ;;  %v1589_v4 = vmov 0.0   ;;  %vm1136_vm14 = vcmask 523264  }
  0x20   :  { %1453 = vmatprep.mubr.msk.f32.mxu1 %vm239_vm1, %v194_v55  ;;  %v88_v7 = vand.u32 15, %v34_v0  ;;  %v234_v8 = vsel %vm1767_vm10, %v206_v5, 0.0  ;;  %1470 = vmatprep.subr.mxu1 %v716_v14  ;;  %vm1290_vm15 = vcmask 125952  }
  0x21   :  { %1459 = vmatmul.mubr.msk.f32.vlgmr.msra.gmra.mxu0 %vm239_vm1, %v230_v59  ;;  %v205_v9 = vsel %vm204_vm6, %v202_v57, %v203_v6  ;;  %v212_v11 = vsel %vm204_vm6, %v203_v6, %v196_v40  ;;  %1471 = vmatpush3.msra.mxu1 %v716_v14 }
  0x22   :  { %1461 = vmatprep.mubr.msk.f32.mxu0 %vm239_vm1, %v209_v60  ;;  %vm1780_vm11 = vcmp.ne.s32.totalorder %v88_v7, 15  ;;  %1485 = vmatpush3.msra.mxu0 %v715_v15 }
  0x23   :  { %1454 = vmatmul.mubr.msk.f32.gmra.mxu1 %vm239_vm1, %v164_v58  ;;  %v236_v12 = vsel %vm1780_vm11, %v212_v11, 0.0  ;;  %1498 = vmatprep.subr.mxu1 %v976_v16 }
  0x24   :  { %1512 = vmatprep.subr.mxu0 %v1589_v4 }
  0x25   :  { %1462 = vmatmul.mubr.msk.f32.gmra.mxu0 %vm239_vm1, %v232_v2 }
  0x26   :  { %1464 = vmatprep.mubr.msk.f32.mxu0 %vm239_vm1, %v207_v3 }
  0x29   :  { %1465 = vmatmul.mubr.msk.f32.gmra.mxu0 %vm239_vm1, %v234_v8 }
  0x2a   :  { %1467 = vmatprep.mubr.msk.f32.mxu0 %vm239_vm1, %v205_v9 }
  0x2d   :  { %1468 = vmatmul.mubr.msk.f32.gmra.mxu0 %vm239_vm1, %v236_v12 }
  0xd1   :  { %v1432_v17 = vpop.f32.mrf.mxu0 }
  0xd3   :  { %v334_v18 = vpop.f32.mrf.mxu0 }
  0xd5   :  { %v1435_v19 = vpop.f32.mrf.mxu0 }
  0xd7   :  { %v1446_v21 = vpop.f32.mrf.mxu1  ;;  %v344_v22 = vpop.f32.mrf.mxu0 }
  0xd8   :  { %v472_v30 = vadd.f32 %v1446_v21, %v1432_v17 }
  0xd9   :  { %v466_v23 = vpop.f32.mrf.mxu1  ;;  %v1438_v24 = vpop.f32.mrf.mxu0 }
  0xda   :  { %v467_v34 = vadd.f32 %v466_v23, %v334_v18 }
  0xdb   :  { %v1449_v25 = vpop.f32.mrf.mxu1  ;;  %v354_v26 = vpop.f32.mrf.mxu0 }
  0xdc   :  { %v482_v38 = vadd.f32 %v1449_v25, %v1435_v19 }
  0xdd   :  { %v476_v27 = vpop.f32.mrf.mxu1  ;;  %v1441_v28 = vpop.f32.mrf.mxu0 }
  0xde   :  { %v477_v46 = vadd.f32 %v476_v27, %v344_v22 }
  0xdf   :  { %v364_v29 = vpop.f32.mrf.mxu0  ;;  %v1452_v31 = vpop.f32.mrf.mxu1 }
  0xe0   :  { %v492_v48 = vadd.f32 %v1452_v31, %v1438_v24 }
  0xe1   :  { %v1460_v32 = vpop.f32.mrf.mxu0  ;;  %v486_v39 = vpop.f32.mrf.mxu1 }
  0xe2   :  { %v639_v35 = vadd.f32 %v1460_v32, %v472_v30  ;;  %v487_v55 = vadd.f32 %v486_v39, %v354_v26 }
  0xe3   :  { %v599_v37 = vpop.f32.mrf.mxu0  ;;  %v1455_v49 = vpop.f32.mrf.mxu1 }
  0xe4   :  { %v638_v40 = vadd.f32 %v599_v37, %v467_v34  ;;  %v652_v41 = vadd.f32 %v1334_v36, %v639_v35  ;;  %v502_v60 = vadd.f32 %v1455_v49, %v1441_v28 }
  0xe5   :  { %v1463_v42 = vpop.f32.mrf.mxu0  ;;  %v496_v62 = vpop.f32.mrf.mxu1 }
  0xe6   :  { %v651_v43 = vadd.f32 %v1334_v36, %v638_v40  ;;  %v641_v44 = vadd.f32 %v1463_v42, %v482_v38  ;;  %v660_v51 = vmax.f32 %v652_v41, 0.0  ;;  %v497_v8 = vadd.f32 %v496_v62, %v364_v29 }
  0xe7   :  { %v609_v47 = vpop.f32.mrf.mxu0 }
  0xe8   :  { %v1791_v50 = vmax.f32 %v651_v43, 0.0  ;;  %v640_v53 = vadd.f32 %v609_v47, %v477_v46  ;;  %v654_v56 = vadd.f32 %v1334_v36, %v641_v44  ;;  %v692_v26 = vrot.slane %v660_v51, 1 }
  0xe9   :  { %v1466_v54 = vpop.f32.mrf.mxu0 }
  0xea   :  { %v643_v57 = vadd.f32 %v1466_v54, %v492_v48  ;;  %1472 = vmatprep.mubr.msk.f32.mxu1 %vm717_vm12, %v1791_v50  ;;  %v653_v58 = vadd.f32 %v1334_v36, %v640_v53  ;;  %v662_v3 = vmax.f32 %v654_v56, 0.0  ;;  %v667_v21 = vrot.slane %v1791_v50, 7 }
  0xeb   :  { %v619_v59 = vpop.f32.mrf.mxu0  ;;  %1473 = vmatmul.mubr.msk.f32.vlgmr.msra.gmra.mxu1 %vm717_vm12, %v660_v51  ;;  %v691_v22 = vrot.slane %v1791_v50, 1 }
  0xec   :  { %v642_v63 = vadd.f32 %v619_v59, %v487_v55  ;;  %1499 = vmatpush3.msra.mxu1 %v976_v16  ;;  %v661_v0 = vmax.f32 %v653_v58, 0.0  ;;  %v656_v5 = vadd.f32 %v1334_v36, %v643_v57  ;;  %v668_v16 = vrot.slane %v660_v51, 7  ;;  %v1210_v57 = vld [vmem:[#allocation2 + $0x40] sm:$0xff] }
  0xed   :  { %v1469_v2 = vpop.f32.mrf.mxu0  ;;  %v670_v30 = vrot.slane %v662_v3, 7  ;;  %v705_v34 = vsel %vm204_vm6, %v691_v22, %v692_v26  ;;  %v694_v37 = vrot.slane %v662_v3, 1  ;;  %1531 = vmatprep.subr.mxu1 %v1589_v4 }
  0xee   :  { %v655_v6 = vadd.f32 %v1334_v36, %v642_v63  ;;  %v645_v7 = vadd.f32 %v1469_v2, %v502_v60  ;;  %1475 = vmatprep.mubr.msk.f32.mxu1 %vm717_vm12, %v661_v0  ;;  %v669_v15 = vrot.slane %v661_v0, 7  ;;  %v664_v17 = vmax.f32 %v656_v5, 0.0 }
  0xef   :  { %v629_v9 = vpop.f32.mrf.mxu0  ;;  %1476 = vmatmul.mubr.msk.f32.gmra.mxu1 %vm717_vm12, %v662_v3  ;;  %v693_v23 = vrot.slane %v661_v0, 1  ;;  %v681_v35 = vsel %vm163_vm2, %v667_v21, %v668_v16 }
  0xf0   :  { %v663_v11 = vmax.f32 %v655_v6, 0.0  ;;  %v658_v12 = vadd.f32 %v1334_v36, %v645_v7  ;;  %v644_v14 = vadd.f32 %v629_v9, %v497_v8  ;;  %v680_v29 = vsel %vm163_vm2, %v668_v16, %v669_v15 }
  0xf1   :  { %v685_v13 = vsel %vm1657_vm4, %v680_v29, 0.0  ;;  %v672_v40 = vrot.slane %v664_v17, 7  ;;  %v703_v43 = vsel %vm204_vm6, %v693_v23, %v694_v37  ;;  %v679_v20 = vsel %vm163_vm2, %v669_v15, %v670_v30 }
  0xf2   :  { %v666_v18 = vmax.f32 %v658_v12, 0.0  ;;  %1478 = vmatprep.mubr.msk.f32.mxu1 %vm717_vm12, %v663_v11  ;;  %v657_v19 = vadd.f32 %v1334_v36, %v644_v14  ;;  %v671_v27 = vrot.slane %v663_v11, 7  ;;  %v695_v32 = vrot.slane %v663_v11, 1 }
  0xf3   :  { %1479 = vmatmul.mubr.msk.f32.gmra.mxu1 %vm717_vm12, %v664_v17  ;;  %v704_v36 = vsel %vm204_vm6, %v692_v26, %v693_v23  ;;  %v696_v46 = vrot.slane %v664_v17, 1 }
  0xf4   :  { %v674_v24 = vrot.slane %v666_v18, 7  ;;  %v665_v25 = vmax.f32 %v657_v19, 0.0  ;;  %v678_v39 = vsel %vm163_vm2, %v670_v30, %v671_v27  ;;  %v708_v41 = vsel %vm1733_vm8, %v704_v36, 0.0 }
  0xf5   :  { %v702_v44 = vsel %vm204_vm6, %v694_v37, %v695_v32  ;;  %v687_v52 = vsel %vm1695_vm5, %v678_v39, 0.0  ;;  %v698_v49 = vrot.slane %v666_v18, 1  ;;  %v701_v50 = vsel %vm204_vm6, %v695_v32, %v696_v46 }
  0xf6   :  { %v682_v28 = vsel %vm163_vm2, %v674_v24, %v667_v21  ;;  %1481 = vmatprep.mubr.msk.f32.mxu1 %vm717_vm12, %v665_v25  ;;  %v673_v38 = vrot.slane %v665_v25, 7  ;;  %v697_v42 = vrot.slane %v665_v25, 1  ;;  %v710_v48 = vsel %vm1753_vm9, %v702_v44, 0.0 }
  0xf7   :  { %v683_v31 = vsel %vm1632_vm3, %v682_v28, 0.0  ;;  %1482 = vmatmul.mubr.msk.f32.gmra.mxu1 %vm717_vm12, %v666_v18  ;;  %v677_v51 = vsel %vm163_vm2, %v671_v27, %v672_v40  ;;  %v706_v56 = vsel %vm204_vm6, %v698_v49, %v691_v22  ;;  %v1359_v28 = vld [vmem:[#allocation2 + $0x38] ss:$0 sm:$0xff] }
  0xf8   :  { %1486 = vmatprep.mubr.msk.f32.mxu0 %vm717_vm12, %v683_v31  ;;  %1500 = vmatprep.mubr.msk.f32.mxu1 %vm717_vm12, %v705_v34  ;;  %v676_v47 = vsel %vm163_vm2, %v672_v40, %v673_v38  ;;  %v700_v33 = vsel %vm204_vm6, %v696_v46, %v697_v42  ;;  %v699_v54 = vsel %vm204_vm6, %v697_v42, %v698_v49  ;;  %v714_v45 = vsel %vm1780_vm11, %v706_v56, 0.0  ;;  %v1361_v56 = vld [vmem:[#allocation2 + $0x48] ss:$0 sm:$0xff] }
  0xf9   :  { %1487 = vmatmul.mubr.msk.f32.vlgmr.msra.gmra.mxu0 %vm717_vm12, %v681_v35  ;;  %v689_v61 = vsel %vm1716_vm7, %v676_v47, 0.0  ;;  %v712_v53 = vsel %vm1767_vm10, %v700_v33, 0.0  ;;  %v675_v55 = vsel %vm163_vm2, %v673_v38, %v674_v24 }
  0xfa   :  { %1489 = vmatprep.mubr.msk.f32.mxu0 %vm717_vm12, %v685_v13 }
  0xfb   :  { %1501 = vmatmul.mubr.msk.f32.vlgmr.msra.gmra.mxu1 %vm717_vm12, %v708_v41 }
  0xfc   :  { %1503 = vmatprep.mubr.msk.f32.mxu1 %vm717_vm12, %v703_v43  ;;  %1532 = vmatpush3.msra.mxu1 %v1210_v57 }
  0xfd   :  { %1490 = vmatmul.mubr.msk.f32.gmra.mxu0 %vm717_vm12, %v679_v20 }
  0xfe   :  { %1492 = vmatprep.mubr.msk.f32.mxu0 %vm717_vm12, %v687_v52 }
  0xff   :  { %1504 = vmatmul.mubr.msk.f32.gmra.mxu1 %vm717_vm12, %v710_v48 }
 0x100   :  { %1506 = vmatprep.mubr.msk.f32.mxu1 %vm717_vm12, %v701_v50 }
 0x101   :  { %1493 = vmatmul.mubr.msk.f32.gmra.mxu0 %vm717_vm12, %v677_v51 }
 0x102   :  { %1495 = vmatprep.mubr.msk.f32.mxu0 %vm717_vm12, %v689_v61 }
 0x103   :  { %1507 = vmatmul.mubr.msk.f32.gmra.mxu1 %vm717_vm12, %v712_v53  ;;  %v1135_v53 = vld [vmem:[#allocation2 + $0x50] sm:$0xf] }
 0x104   :  { %1509 = vmatprep.mubr.msk.f32.mxu1 %vm717_vm12, %v699_v54 }
 0x105   :  { %1496 = vmatmul.mubr.msk.f32.gmra.mxu0 %vm717_vm12, %v675_v55 }
 0x106   :  { %1528 = vmatprep.mubr.msk.f32.mxu0 %vm1590_vm13, %v1589_v4 }
 0x107   :  { %1510 = vmatmul.mubr.msk.f32.gmra.mxu1 %vm717_vm12, %v714_v45 }
 0x108   :  { %1533 = vmatprep.mubr.msk.f32.mxu1 %vm1590_vm13, %v1589_v4 }
 0x1ab   :  { %v1474_v1 = vpop.f32.mrf.mxu1 }
 0x1ad   :  { %v808_v58 = vpop.f32.mrf.mxu1 }
 0x1af   :  { %v1477_v59 = vpop.f32.mrf.mxu1 }
 0x1b1   :  { %v818_v60 = vpop.f32.mrf.mxu1 }
 0x1b3   :  { %v1480_v10 = vpop.f32.mrf.mxu1 }
 0x1b5   :  { %v828_v62 = vpop.f32.mrf.mxu1 }
 0x1b7   :  { %v1483_v63 = vpop.f32.mrf.mxu1 }
 0x1b9   :  { %v1488_v0 = vpop.f32.mrf.mxu0  ;;  %v838_v2 = vpop.f32.mrf.mxu1 }
 0x1ba   :  { %v943_v35 = vadd.f32 %v1488_v0, %v1474_v1 }
 0x1bb   :  { %v937_v3 = vpop.f32.mrf.mxu0  ;;  %v1502_v5 = vpop.f32.mrf.mxu1 }
 0x1bc   :  { %v938_v39 = vadd.f32 %v937_v3, %v808_v58  ;;  %v1107_v43 = vadd.f32 %v1502_v5, %v943_v35 }
 0x1bd   :  { %v1491_v6 = vpop.f32.mrf.mxu0  ;;  %v1067_v7 = vpop.f32.mrf.mxu1 }
 0x1be   :  { %v953_v25 = vadd.f32 %v1491_v6, %v1477_v59  ;;  %v1106_v52 = vadd.f32 %v1067_v7, %v938_v39  ;;  %v1120_v48 = vadd.f32 %v1359_v28, %v1107_v43 }
 0x1bf   :  { %v947_v8 = vpop.f32.mrf.mxu0  ;;  %v1505_v9 = vpop.f32.mrf.mxu1 }
 0x1c0   :  { %v948_v30 = vadd.f32 %v947_v8, %v818_v60  ;;  %v1109_v36 = vadd.f32 %v1505_v9, %v953_v25  ;;  %v1119_v50 = vadd.f32 %v1359_v28, %v1106_v52  ;;  %v1128_v33 = vmax.f32 %v1120_v48, 0.0 }
 0x1c1   :  { %v1494_v11 = vpop.f32.mrf.mxu0  ;;  %v1077_v12 = vpop.f32.mrf.mxu1 }
 0x1c2   :  { %v963_v17 = vadd.f32 %v1494_v11, %v1480_v10  ;;  %v1108_v40 = vadd.f32 %v1077_v12, %v948_v30  ;;  %v1122_v20 = vadd.f32 %v1359_v28, %v1109_v36  ;;  %v1127_v61 = vmax.f32 %v1119_v50, 0.0 }
 0x1c3   :  { %v957_v14 = vpop.f32.mrf.mxu0  ;;  %v1508_v15 = vpop.f32.mrf.mxu1 }
 0x1c4   :  { %v958_v21 = vadd.f32 %v957_v14, %v828_v62  ;;  %v1111_v26 = vadd.f32 %v1508_v15, %v963_v17  ;;  %v1121_v46 = vadd.f32 %v1359_v28, %v1108_v40  ;;  %v1130_v49 = vmax.f32 %v1122_v20, 0.0 }
 0x1c5   :  { %v1497_v18 = vpop.f32.mrf.mxu0  ;;  %v1087_v19 = vpop.f32.mrf.mxu1 }
 0x1c6   :  { %v973_v16 = vadd.f32 %v1497_v18, %v1483_v63  ;;  %v1110_v31 = vadd.f32 %v1087_v19, %v958_v21  ;;  %v1124_v13 = vadd.f32 %v1359_v28, %v1111_v26  ;;  %v1129_v51 = vmax.f32 %v1121_v46, 0.0 }
 0x1c7   :  { %v967_v22 = vpop.f32.mrf.mxu0  ;;  %v1511_v24 = vpop.f32.mrf.mxu1 }
 0x1c8   :  { %v968_v23 = vadd.f32 %v967_v22, %v838_v2  ;;  %v1113_v27 = vadd.f32 %v1511_v24, %v973_v16  ;;  %v1123_v41 = vadd.f32 %v1359_v28, %v1110_v31  ;;  %v1132_v44 = vmax.f32 %v1124_v13, 0.0 }
 0x1c9   :  { %v1097_v29 = vpop.f32.mrf.mxu1 }
 0x1ca   :  { %v1126_v32 = vadd.f32 %v1359_v28, %v1113_v27  ;;  %v1112_v34 = vadd.f32 %v1097_v29, %v968_v23  ;;  %v1131_v47 = vmax.f32 %v1123_v41, 0.0 }
 0x1cc   :  { %v1134_v37 = vmax.f32 %v1126_v32, 0.0  ;;  %v1125_v38 = vadd.f32 %v1359_v28, %v1112_v34 }
 0x1ce   :  { %v1133_v42 = vmax.f32 %v1125_v38, 0.0  ;;  %1513 = vmatpush3.msra.mxu0 %v1134_v37 }
 0x1cf   :  { %1514 = vmatprep.subr.mxu0 %v1589_v4 }
 0x1d0   :  { %1515 = vmatpush3.msra.mxu0 %v1133_v42 }
 0x1d1   :  { %1516 = vmatprep.subr.mxu0 %v1589_v4 }
 0x1d2   :  { %1517 = vmatpush3.msra.mxu0 %v1132_v44 }
 0x1d3   :  { %1518 = vmatprep.subr.mxu0 %v1589_v4 }
 0x1d4   :  { %1519 = vmatpush3.msra.mxu0 %v1131_v47 }
 0x1d5   :  { %1520 = vmatprep.subr.mxu0 %v1589_v4 }
 0x1d6   :  { %1521 = vmatpush3.msra.mxu0 %v1130_v49 }
 0x1d7   :  { %1522 = vmatprep.subr.mxu0 %v1589_v4 }
 0x1d8   :  { %1523 = vmatpush3.msra.mxu0 %v1129_v51 }
 0x1d9   :  { %1524 = vmatprep.subr.mxu0 %v1589_v4 }
 0x1da   :  { %1525 = vmatpush3.msra.mxu0 %v1128_v33 }
 0x1db   :  { %1526 = vmatprep.subr.mxu0 %v1589_v4 }
 0x1dc   :  { %1527 = vmatpush3.msra.mxu0 %v1127_v61 }
 0x1dd   :  { %1529 = vmatmul.mubr.msk.f32.vlgmr.msra.gmra.mxu0 %vm1136_vm14, %v1135_v53 }
 0x29d   :  { %v1206_v54 = vpop.f32.mrf.mxu0 }
 0x29e   :  { %1534 = vmatmul.mubr.msk.f32.vlgmr.msra.gmra.mxu1 %vm717_vm12, %v1206_v54 }
 0x29f   :  { %v1530_v55 = vpop.f32.mrf.mxu0 }
 0x35e   :  { %v1285_v45 = vpop.f32.mrf.mxu1 }
 0x35f   :  { %v1286_v57 = vadd.f32 %v1361_v56, %v1285_v45 }
 0x360   :  { %v1535_v1 = vpop.f32.mrf.mxu1 }
 0x361   :  { %v1289_v58 = vmax.f32 %v1286_v57, 0.0 }
 0x363   :  { %1291 = vst.msk [vmem:[#allocation5] sm:$0xf] %vm1290_vm15, %v1289_v58 }
 0x364   :  { %1573 = shalt.err (!%p1570_p9)
}
 0x365   :  { %1301 = dma.vmem_to_hbm [thread:$0]  %s1299_s3, 64, %s1885_s2, [#allocation4]  }
 0x366   :  { %1584 = dma.done.wait [#allocation4], 64  }
 0x367   :  { %1585 = vsyncadd [#allocation4], 4294967232 }
 0x368   :  { %1305 = vsyncpa [#allocation3], 1 }
 0x369   :  { %1306 = vsyncpa [#allocation4], 1 }

</bundles_post_ra>
